<compile_context>
chip_gen: v7x
topology: tpu7x:2x2x1
jax: 0.10.0
libtpu: 0.0.40
codegen_flags: <defaults>
</compile_context>

<pallas_src>
from functools import partial

import jax
import jax.numpy as jnp
from jax import lax
from jax.experimental import pallas as pl
from jax.experimental.pallas import tpu as pltpu

E_CHAR = 50      # fixed by the module (self.e_char = 50)
KERNEL_K = 5     # standard a5 CNN kernel size
CONV_PAD = 1     # standard a5 CNN padding


def _char_cnn_highway_kernel(idx_ref, wfold_ref, bc_ref, whwy_ref, bhwy_ref, out_ref):
    # idx_ref  : (tile_n, M)            int32 char indices
    # wfold_ref: (K, V, e_word)         bf16 per-tap conv weights with embedding folded in
    # bc_ref   : (1, e_word)            f32 conv bias
    # whwy_ref : (e_word, 2*e_word)     bf16 fused highway [proj | gate] weights (in, out)
    # bhwy_ref : (1, 2*e_word)          f32 fused highway biases
    # out_ref  : (tile_n, e_word)
    tile_n, m = idx_ref.shape
    _, v, e_word = wfold_ref.shape
    l_out = m + 2 * CONV_PAD - KERNEL_K + 1            # Conv1d output length (>= 1)

    idx = idx_ref[...]                                 # tiny int32 tile

    # One-hot gather matrices, built ONCE per char position (bf16 0/1 is exact).
    iota_v = lax.broadcasted_iota(jnp.int32, (tile_n, v), 1)
    oh = [(idx[:, p:p + 1] == iota_v).astype(jnp.bfloat16) for p in range(m)]

    # Per-tap folded weights (V, e_word), loaded once and reused across all time steps.
    wtaps = [wfold_ref[j] for j in range(KERNEL_K)]

    # Conv as K accumulating small-K matmuls per time step; zero-padded positions are
    # simply skipped (they contribute exactly zero).  Bias/ReLU are hoisted (monotone,
    # t-independent), so we pool the raw accumulators and apply them once afterwards.
    pooled_raw = None
    for t in range(l_out):                             # static, small unrolled loop
        acc = None
        for j in range(KERNEL_K):
            p = t + j - CONV_PAD
            if 0 <= p < m:
                contrib = jnp.dot(oh[p], wtaps[j],
                                  preferred_element_type=jnp.float32)
                acc = contrib if acc is None else acc + contrib
        pooled_raw = acc if pooled_raw is None else jnp.maximum(pooled_raw, acc)

    pooled = jnp.maximum(pooled_raw + bc_ref[...], 0.0)     # (tile_n, e_word) f32

    # Highway, fused: one bf16 matmul gives [proj | gate] columns, f32 accumulation.
    h2 = jnp.dot(pooled.astype(jnp.bfloat16), whwy_ref[...],
                 preferred_element_type=jnp.float32) + bhwy_ref[...]
    proj = jnp.maximum(h2[:, :e_word], 0.0)
    gate = jax.nn.sigmoid(h2[:, e_word:])
    out_ref[...] = (pooled + gate * (proj - pooled)).astype(out_ref.dtype)


def _round_up(x, m):
    return (x + m - 1) // m * m


def fold_params(params):
    """One-time weight prep: fold char embedding into conv taps (in f32), fuse highway,
    then cast matmul operands to bf16.  Biases stay f32."""
    emb = params["embedding"].astype(jnp.float32)                         # (V, e_char)
    wfold = jnp.stack([emb @ params["w_conv"][j].astype(jnp.float32)
                       for j in range(KERNEL_K)], axis=0)                 # (K, V, e_word) f32
    w_hwy = jnp.concatenate([params["w_proj"], params["w_gate"]], axis=1) # (e, 2e)
    b_hwy = jnp.concatenate([params["b_proj"], params["b_gate"]], axis=1) # (1, 2e)
    return dict(
        wfold=wfold.astype(jnp.bfloat16),
        b_conv=params["b_conv"].astype(jnp.float32),
        w_hwy=w_hwy.astype(jnp.bfloat16),
        b_hwy=b_hwy.astype(jnp.float32),
    )


@partial(jax.jit, static_argnames=("tile_n",))
def model_embeddings_forward(x_padded, folded, *, tile_n=256):
    """x_padded: (S, B, M) int32 char indices -> (S, B, e_word) float32 (eval mode)."""
    S, B, M = x_padded.shape
    K, V, e_word = folded["wfold"].shape
    N = S * B
    l_out = M + 2 * CONV_PAD - KERNEL_K + 1
    assert l_out >= 1, "max_word_length too small for k=5, pad=1 conv"

    idx = x_padded.reshape(N, M).astype(jnp.int32)

    # Word-axis tile: multiple of 8, capped by tile_n.  Force grid >= 2 when possible so
    # dimension_semantics=("parallel",) can use both TensorCores on v7x.
    tile = min(_round_up(tile_n, 8), _round_up(N, 8))
    if N > 8 and _round_up(N, tile) // tile < 2:
        tile = _round_up(pl.cdiv(N, 2), 8)
    n_pad = _round_up(N, tile)
    if n_pad != N:
        idx = jnp.pad(idx, ((0, n_pad - N), (0, 0)))     # pad rows are discarded below
    grid = (n_pad // tile,)

    out = pl.pallas_call(
        _char_cnn_highway_kernel,
        out_shape=jax.ShapeDtypeStruct((n_pad, e_word), jnp.float32),
        grid_spec=pltpu.PrefetchScalarGridSpec(
            num_scalar_prefetch=0,
            grid=grid,
            in_specs=[
                pl.BlockSpec((tile, M), lambda i: (i, 0)),
                pl.BlockSpec((KERNEL_K, V, e_word), lambda i: (0, 0, 0)),
                pl.BlockSpec((1, e_word), lambda i: (0, 0)),
                pl.BlockSpec((e_word, 2 * e_word), lambda i: (0, 0)),
                pl.BlockSpec((1, 2 * e_word), lambda i: (0, 0)),
            ],
            out_specs=pl.BlockSpec((tile, e_word), lambda i: (i, 0)),
        ),
        compiler_params=pltpu.CompilerParams(dimension_semantics=("parallel",)),
    )(idx, folded["wfold"], folded["b_conv"], folded["w_hwy"], folded["b_hwy"])
    return out[:N].reshape(S, B, e_word)


def _reference_forward(x_padded, params):
    """Pure-JAX f32 reference mirroring the PyTorch forward (eval mode), unfused weights."""
    S, B, M = x_padded.shape
    e_word = params["b_conv"].shape[-1]
    N = S * B
    x_emb = jnp.take(params["embedding"], x_padded.reshape(N, M), axis=0)    # (N, M, e_char)
    x_emb = jnp.pad(x_emb, ((0, 0), (CONV_PAD, CONV_PAD), (0, 0)))
    l_out = M + 2 * CONV_PAD - KERNEL_K + 1
    conv = jnp.zeros((N, l_out, e_word), jnp.float32) + params["b_conv"][None]
    for j in range(KERNEL_K):
        conv = conv + jnp.einsum("nlc,co->nlo", x_emb[:, j:j + l_out, :],
                                 params["w_conv"][j])
    pooled = jnp.max(jnp.maximum(conv, 0.0), axis=1)
    proj = jnp.maximum(pooled @ params["w_proj"] + params["b_proj"], 0.0)
    gate = jax.nn.sigmoid(pooled @ params["w_gate"] + params["b_gate"])
    hwy = gate * proj + (1.0 - gate) * pooled
    return hwy.reshape(S, B, e_word)


def init_params(key, vocab_char_size, word_embed_size, pad_idx=0):
    ks = jax.random.split(key, 7)
    emb = 0.1 * jax.random.normal(ks[0], (vocab_char_size, E_CHAR), jnp.float32)
    emb = emb.at[pad_idx].set(0.0)                      # nn.Embedding padding_idx row
    # torch Conv1d weight is (e_word, e_char, k); store as (k, e_char, e_word).
    w_conv_t = 0.1 * jax.random.normal(ks[1], (word_embed_size, E_CHAR, KERNEL_K), jnp.float32)
    w_conv = jnp.transpose(w_conv_t, (2, 1, 0))
    b_conv = 0.1 * jax.random.normal(ks[2], (1, word_embed_size), jnp.float32)
    # torch Linear weight is (out, in); store transposed (in, out).
    w_proj = 0.1 * jax.random.normal(ks[3], (word_embed_size, word_embed_size), jnp.float32)
    b_proj = 0.1 * jax.random.normal(ks[4], (1, word_embed_size), jnp.float32)
    w_gate = 0.1 * jax.random.normal(ks[5], (word_embed_size, word_embed_size), jnp.float32)
    b_gate = 0.1 * jax.random.normal(ks[6], (1, word_embed_size), jnp.float32)
    return dict(embedding=emb, w_conv=w_conv, b_conv=b_conv,
                w_proj=w_proj, b_proj=b_proj, w_gate=w_gate, b_gate=b_gate)


if __name__ == "__main__":
    SENT_LEN, BATCH, MAX_WORD_LEN = 8, 2, 8
    VOCAB_CHARS, WORD_EMBED_SIZE = 30, 128     # e_word=128 keeps output stores lane-dense

    key = jax.random.PRNGKey(0)
    k_param, k_data = jax.random.split(key)
    params = init_params(k_param, VOCAB_CHARS, WORD_EMBED_SIZE, pad_idx=0)
    folded = fold_params(params)               # one-time prep: fold/fuse/bf16-cast weights
    x_padded = jax.random.randint(k_data, (SENT_LEN, BATCH, MAX_WORD_LEN),
                                  0, VOCAB_CHARS, dtype=jnp.int32)

    out = jax.block_until_ready(model_embeddings_forward(x_padded, folded, tile_n=256))
    assert out.shape == (SENT_LEN, BATCH, WORD_EMBED_SIZE)

    ref = jax.block_until_ready(_reference_forward(x_padded, params))
    # Tolerance covers bf16-rounded weights (f32 accumulation); structural bugs would
    # produce errors orders of magnitude larger.
    assert jnp.allclose(out, ref, rtol=1e-2, atol=1e-2), "mismatch vs JAX reference"

    print("KERNEL_OK")
</pallas_src>

<mosaic_0001>
module attributes {stable_mosaic.version = 11 : i64} {
  func.func @_char_cnn_highway_kernel(%arg0: i32, %arg1: memref<8x8xi32, #tpu.memory_space<vmem>>, %arg2: memref<5x30x128xbf16, #tpu.memory_space<vmem>>, %arg3: memref<1x128xf32, #tpu.memory_space<vmem>>, %arg4: memref<128x256xbf16, #tpu.memory_space<vmem>>, %arg5: memref<1x256xf32, #tpu.memory_space<vmem>>, %arg6: memref<8x128xf32, #tpu.memory_space<vmem>>) attributes {dimension_semantics = [#tpu.dimension_semantics<parallel>], iteration_bounds = array<i64: 2>, scalar_prefetch = 0 : i64, scratch_operands = 0 : i64, tpu.core_type = #tpu.core_type<tc>, window_params = [{transform_indices = @transform_0, window_bounds = array<i64: 8, 8>}, {pipeline_mode = #tpu.pipeline_mode<synchronous>, transform_indices = @transform_1, window_bounds = array<i64: 5, 30, 128>}, {pipeline_mode = #tpu.pipeline_mode<synchronous>, transform_indices = @transform_2, window_bounds = array<i64: 1, 128>}, {pipeline_mode = #tpu.pipeline_mode<synchronous>, transform_indices = @transform_3, window_bounds = array<i64: 128, 256>}, {pipeline_mode = #tpu.pipeline_mode<synchronous>, transform_indices = @transform_4, window_bounds = array<i64: 1, 256>}, {transform_indices = @transform_5, window_bounds = array<i64: 8, 128>}]} {
    %c0 = arith.constant 0 : index
    %c0_0 = arith.constant 0 : index
    %0 = vector.load %arg1[%c0, %c0_0] : memref<8x8xi32, #tpu.memory_space<vmem>>, vector<8x8xi32>
    %1 = tpu.iota {dimensions = array<i32: 1>} : vector<8x30xi32>
    %2 = vector.extract_strided_slice %0 {offsets = [0, 0], sizes = [8, 1], strides = [1, 1]} : vector<8x8xi32> to vector<8x1xi32>
    %3 = vector.broadcast %2 : vector<8x1xi32> to vector<8x30xi32>
    %4 = arith.cmpi eq, %3, %1 : vector<8x30xi32>
    %5 = arith.extui %4 : vector<8x30xi1> to vector<8x30xi32>
    %6 = arith.sitofp %5 : vector<8x30xi32> to vector<8x30xf32>
    %7 = arith.truncf %6 : vector<8x30xf32> to vector<8x30xbf16>
    %8 = vector.extract_strided_slice %0 {offsets = [0, 1], sizes = [8, 1], strides = [1, 1]} : vector<8x8xi32> to vector<8x1xi32>
    %9 = vector.broadcast %8 : vector<8x1xi32> to vector<8x30xi32>
    %10 = arith.cmpi eq, %9, %1 : vector<8x30xi32>
    %11 = arith.extui %10 : vector<8x30xi1> to vector<8x30xi32>
    %12 = arith.sitofp %11 : vector<8x30xi32> to vector<8x30xf32>
    %13 = arith.truncf %12 : vector<8x30xf32> to vector<8x30xbf16>
    %14 = vector.extract_strided_slice %0 {offsets = [0, 2], sizes = [8, 1], strides = [1, 1]} : vector<8x8xi32> to vector<8x1xi32>
    %15 = vector.broadcast %14 : vector<8x1xi32> to vector<8x30xi32>
    %16 = arith.cmpi eq, %15, %1 : vector<8x30xi32>
    %17 = arith.extui %16 : vector<8x30xi1> to vector<8x30xi32>
    %18 = arith.sitofp %17 : vector<8x30xi32> to vector<8x30xf32>
    %19 = arith.truncf %18 : vector<8x30xf32> to vector<8x30xbf16>
    %20 = vector.extract_strided_slice %0 {offsets = [0, 3], sizes = [8, 1], strides = [1, 1]} : vector<8x8xi32> to vector<8x1xi32>
    %21 = vector.broadcast %20 : vector<8x1xi32> to vector<8x30xi32>
    %22 = arith.cmpi eq, %21, %1 : vector<8x30xi32>
    %23 = arith.extui %22 : vector<8x30xi1> to vector<8x30xi32>
    %24 = arith.sitofp %23 : vector<8x30xi32> to vector<8x30xf32>
    %25 = arith.truncf %24 : vector<8x30xf32> to vector<8x30xbf16>
    %26 = vector.extract_strided_slice %0 {offsets = [0, 4], sizes = [8, 1], strides = [1, 1]} : vector<8x8xi32> to vector<8x1xi32>
    %27 = vector.broadcast %26 : vector<8x1xi32> to vector<8x30xi32>
    %28 = arith.cmpi eq, %27, %1 : vector<8x30xi32>
    %29 = arith.extui %28 : vector<8x30xi1> to vector<8x30xi32>
    %30 = arith.sitofp %29 : vector<8x30xi32> to vector<8x30xf32>
    %31 = arith.truncf %30 : vector<8x30xf32> to vector<8x30xbf16>
    %32 = vector.extract_strided_slice %0 {offsets = [0, 5], sizes = [8, 1], strides = [1, 1]} : vector<8x8xi32> to vector<8x1xi32>
    %33 = vector.broadcast %32 : vector<8x1xi32> to vector<8x30xi32>
    %34 = arith.cmpi eq, %33, %1 : vector<8x30xi32>
    %35 = arith.extui %34 : vector<8x30xi1> to vector<8x30xi32>
    %36 = arith.sitofp %35 : vector<8x30xi32> to vector<8x30xf32>
    %37 = arith.truncf %36 : vector<8x30xf32> to vector<8x30xbf16>
    %38 = vector.extract_strided_slice %0 {offsets = [0, 6], sizes = [8, 1], strides = [1, 1]} : vector<8x8xi32> to vector<8x1xi32>
    %39 = vector.broadcast %38 : vector<8x1xi32> to vector<8x30xi32>
    %40 = arith.cmpi eq, %39, %1 : vector<8x30xi32>
    %41 = arith.extui %40 : vector<8x30xi1> to vector<8x30xi32>
    %42 = arith.sitofp %41 : vector<8x30xi32> to vector<8x30xf32>
    %43 = arith.truncf %42 : vector<8x30xf32> to vector<8x30xbf16>
    %44 = vector.extract_strided_slice %0 {offsets = [0, 7], sizes = [8, 1], strides = [1, 1]} : vector<8x8xi32> to vector<8x1xi32>
    %45 = vector.broadcast %44 : vector<8x1xi32> to vector<8x30xi32>
    %46 = arith.cmpi eq, %45, %1 : vector<8x30xi32>
    %47 = arith.extui %46 : vector<8x30xi1> to vector<8x30xi32>
    %48 = arith.sitofp %47 : vector<8x30xi32> to vector<8x30xf32>
    %49 = arith.truncf %48 : vector<8x30xf32> to vector<8x30xbf16>
    %c0_1 = arith.constant 0 : index
    %c0_2 = arith.constant 0 : index
    %c0_3 = arith.constant 0 : index
    %50 = vector.load %arg2[%c0_1, %c0_2, %c0_3] : memref<5x30x128xbf16, #tpu.memory_space<vmem>>, vector<1x30x128xbf16>
    %51 = vector.shape_cast %50 : vector<1x30x128xbf16> to vector<30x128xbf16>
    %c1 = arith.constant 1 : index
    %c0_4 = arith.constant 0 : index
    %c0_5 = arith.constant 0 : index
    %52 = vector.load %arg2[%c1, %c0_4, %c0_5] : memref<5x30x128xbf16, #tpu.memory_space<vmem>>, vector<1x30x128xbf16>
    %53 = vector.shape_cast %52 : vector<1x30x128xbf16> to vector<30x128xbf16>
    %c2 = arith.constant 2 : index
    %c0_6 = arith.constant 0 : index
    %c0_7 = arith.constant 0 : index
    %54 = vector.load %arg2[%c2, %c0_6, %c0_7] : memref<5x30x128xbf16, #tpu.memory_space<vmem>>, vector<1x30x128xbf16>
    %55 = vector.shape_cast %54 : vector<1x30x128xbf16> to vector<30x128xbf16>
    %c3 = arith.constant 3 : index
    %c0_8 = arith.constant 0 : index
    %c0_9 = arith.constant 0 : index
    %56 = vector.load %arg2[%c3, %c0_8, %c0_9] : memref<5x30x128xbf16, #tpu.memory_space<vmem>>, vector<1x30x128xbf16>
    %57 = vector.shape_cast %56 : vector<1x30x128xbf16> to vector<30x128xbf16>
    %c4 = arith.constant 4 : index
    %c0_10 = arith.constant 0 : index
    %c0_11 = arith.constant 0 : index
    %58 = vector.load %arg2[%c4, %c0_10, %c0_11] : memref<5x30x128xbf16, #tpu.memory_space<vmem>>, vector<1x30x128xbf16>
    %59 = vector.shape_cast %58 : vector<1x30x128xbf16> to vector<30x128xbf16>
    %cst = arith.constant dense<0.000000e+00> : vector<8x128xf32>
    %60 = tpu.matmul %7, %53, %cst {dimension_numbers = #tpu.dot_dimension_numbers<[1], [0], [0], [1], [0, 0, 1, 1], [], []>} : vector<8x30xbf16>, vector<30x128xbf16>, vector<8x128xf32> -> vector<8x128xf32>
    %cst_12 = arith.constant dense<0.000000e+00> : vector<8x128xf32>
    %61 = tpu.matmul %13, %55, %cst_12 {dimension_numbers = #tpu.dot_dimension_numbers<[1], [0], [0], [1], [0, 0, 1, 1], [], []>} : vector<8x30xbf16>, vector<30x128xbf16>, vector<8x128xf32> -> vector<8x128xf32>
    %62 = arith.addf %60, %61 : vector<8x128xf32>
    %cst_13 = arith.constant dense<0.000000e+00> : vector<8x128xf32>
    %63 = tpu.matmul %19, %57, %cst_13 {dimension_numbers = #tpu.dot_dimension_numbers<[1], [0], [0], [1], [0, 0, 1, 1], [], []>} : vector<8x30xbf16>, vector<30x128xbf16>, vector<8x128xf32> -> vector<8x128xf32>
    %64 = arith.addf %62, %63 : vector<8x128xf32>
    %cst_14 = arith.constant dense<0.000000e+00> : vector<8x128xf32>
    %65 = tpu.matmul %25, %59, %cst_14 {dimension_numbers = #tpu.dot_dimension_numbers<[1], [0], [0], [1], [0, 0, 1, 1], [], []>} : vector<8x30xbf16>, vector<30x128xbf16>, vector<8x128xf32> -> vector<8x128xf32>
    %66 = arith.addf %64, %65 : vector<8x128xf32>
    %cst_15 = arith.constant dense<0.000000e+00> : vector<8x128xf32>
    %67 = tpu.matmul %7, %51, %cst_15 {dimension_numbers = #tpu.dot_dimension_numbers<[1], [0], [0], [1], [0, 0, 1, 1], [], []>} : vector<8x30xbf16>, vector<30x128xbf16>, vector<8x128xf32> -> vector<8x128xf32>
    %cst_16 = arith.constant dense<0.000000e+00> : vector<8x128xf32>
    %68 = tpu.matmul %13, %53, %cst_16 {dimension_numbers = #tpu.dot_dimension_numbers<[1], [0], [0], [1], [0, 0, 1, 1], [], []>} : vector<8x30xbf16>, vector<30x128xbf16>, vector<8x128xf32> -> vector<8x128xf32>
    %69 = arith.addf %67, %68 : vector<8x128xf32>
    %cst_17 = arith.constant dense<0.000000e+00> : vector<8x128xf32>
    %70 = tpu.matmul %19, %55, %cst_17 {dimension_numbers = #tpu.dot_dimension_numbers<[1], [0], [0], [1], [0, 0, 1, 1], [], []>} : vector<8x30xbf16>, vector<30x128xbf16>, vector<8x128xf32> -> vector<8x128xf32>
    %71 = arith.addf %69, %70 : vector<8x128xf32>
    %cst_18 = arith.constant dense<0.000000e+00> : vector<8x128xf32>
    %72 = tpu.matmul %25, %57, %cst_18 {dimension_numbers = #tpu.dot_dimension_numbers<[1], [0], [0], [1], [0, 0, 1, 1], [], []>} : vector<8x30xbf16>, vector<30x128xbf16>, vector<8x128xf32> -> vector<8x128xf32>
    %73 = arith.addf %71, %72 : vector<8x128xf32>
    %cst_19 = arith.constant dense<0.000000e+00> : vector<8x128xf32>
    %74 = tpu.matmul %31, %59, %cst_19 {dimension_numbers = #tpu.dot_dimension_numbers<[1], [0], [0], [1], [0, 0, 1, 1], [], []>} : vector<8x30xbf16>, vector<30x128xbf16>, vector<8x128xf32> -> vector<8x128xf32>
    %75 = arith.addf %73, %74 : vector<8x128xf32>
    %76 = arith.maximumf %66, %75 : vector<8x128xf32>
    %cst_20 = arith.constant dense<0.000000e+00> : vector<8x128xf32>
    %77 = tpu.matmul %13, %51, %cst_20 {dimension_numbers = #tpu.dot_dimension_numbers<[1], [0], [0], [1], [0, 0, 1, 1], [], []>} : vector<8x30xbf16>, vector<30x128xbf16>, vector<8x128xf32> -> vector<8x128xf32>
    %cst_21 = arith.constant dense<0.000000e+00> : vector<8x128xf32>
    %78 = tpu.matmul %19, %53, %cst_21 {dimension_numbers = #tpu.dot_dimension_numbers<[1], [0], [0], [1], [0, 0, 1, 1], [], []>} : vector<8x30xbf16>, vector<30x128xbf16>, vector<8x128xf32> -> vector<8x128xf32>
    %79 = arith.addf %77, %78 : vector<8x128xf32>
    %cst_22 = arith.constant dense<0.000000e+00> : vector<8x128xf32>
    %80 = tpu.matmul %25, %55, %cst_22 {dimension_numbers = #tpu.dot_dimension_numbers<[1], [0], [0], [1], [0, 0, 1, 1], [], []>} : vector<8x30xbf16>, vector<30x128xbf16>, vector<8x128xf32> -> vector<8x128xf32>
    %81 = arith.addf %79, %80 : vector<8x128xf32>
    %cst_23 = arith.constant dense<0.000000e+00> : vector<8x128xf32>
    %82 = tpu.matmul %31, %57, %cst_23 {dimension_numbers = #tpu.dot_dimension_numbers<[1], [0], [0], [1], [0, 0, 1, 1], [], []>} : vector<8x30xbf16>, vector<30x128xbf16>, vector<8x128xf32> -> vector<8x128xf32>
    %83 = arith.addf %81, %82 : vector<8x128xf32>
    %cst_24 = arith.constant dense<0.000000e+00> : vector<8x128xf32>
    %84 = tpu.matmul %37, %59, %cst_24 {dimension_numbers = #tpu.dot_dimension_numbers<[1], [0], [0], [1], [0, 0, 1, 1], [], []>} : vector<8x30xbf16>, vector<30x128xbf16>, vector<8x128xf32> -> vector<8x128xf32>
    %85 = arith.addf %83, %84 : vector<8x128xf32>
    %86 = arith.maximumf %76, %85 : vector<8x128xf32>
    %cst_25 = arith.constant dense<0.000000e+00> : vector<8x128xf32>
    %87 = tpu.matmul %19, %51, %cst_25 {dimension_numbers = #tpu.dot_dimension_numbers<[1], [0], [0], [1], [0, 0, 1, 1], [], []>} : vector<8x30xbf16>, vector<30x128xbf16>, vector<8x128xf32> -> vector<8x128xf32>
    %cst_26 = arith.constant dense<0.000000e+00> : vector<8x128xf32>
    %88 = tpu.matmul %25, %53, %cst_26 {dimension_numbers = #tpu.dot_dimension_numbers<[1], [0], [0], [1], [0, 0, 1, 1], [], []>} : vector<8x30xbf16>, vector<30x128xbf16>, vector<8x128xf32> -> vector<8x128xf32>
    %89 = arith.addf %87, %88 : vector<8x128xf32>
    %cst_27 = arith.constant dense<0.000000e+00> : vector<8x128xf32>
    %90 = tpu.matmul %31, %55, %cst_27 {dimension_numbers = #tpu.dot_dimension_numbers<[1], [0], [0], [1], [0, 0, 1, 1], [], []>} : vector<8x30xbf16>, vector<30x128xbf16>, vector<8x128xf32> -> vector<8x128xf32>
    %91 = arith.addf %89, %90 : vector<8x128xf32>
    %cst_28 = arith.constant dense<0.000000e+00> : vector<8x128xf32>
    %92 = tpu.matmul %37, %57, %cst_28 {dimension_numbers = #tpu.dot_dimension_numbers<[1], [0], [0], [1], [0, 0, 1, 1], [], []>} : vector<8x30xbf16>, vector<30x128xbf16>, vector<8x128xf32> -> vector<8x128xf32>
    %93 = arith.addf %91, %92 : vector<8x128xf32>
    %cst_29 = arith.constant dense<0.000000e+00> : vector<8x128xf32>
    %94 = tpu.matmul %43, %59, %cst_29 {dimension_numbers = #tpu.dot_dimension_numbers<[1], [0], [0], [1], [0, 0, 1, 1], [], []>} : vector<8x30xbf16>, vector<30x128xbf16>, vector<8x128xf32> -> vector<8x128xf32>
    %95 = arith.addf %93, %94 : vector<8x128xf32>
    %96 = arith.maximumf %86, %95 : vector<8x128xf32>
    %cst_30 = arith.constant dense<0.000000e+00> : vector<8x128xf32>
    %97 = tpu.matmul %25, %51, %cst_30 {dimension_numbers = #tpu.dot_dimension_numbers<[1], [0], [0], [1], [0, 0, 1, 1], [], []>} : vector<8x30xbf16>, vector<30x128xbf16>, vector<8x128xf32> -> vector<8x128xf32>
    %cst_31 = arith.constant dense<0.000000e+00> : vector<8x128xf32>
    %98 = tpu.matmul %31, %53, %cst_31 {dimension_numbers = #tpu.dot_dimension_numbers<[1], [0], [0], [1], [0, 0, 1, 1], [], []>} : vector<8x30xbf16>, vector<30x128xbf16>, vector<8x128xf32> -> vector<8x128xf32>
    %99 = arith.addf %97, %98 : vector<8x128xf32>
    %cst_32 = arith.constant dense<0.000000e+00> : vector<8x128xf32>
    %100 = tpu.matmul %37, %55, %cst_32 {dimension_numbers = #tpu.dot_dimension_numbers<[1], [0], [0], [1], [0, 0, 1, 1], [], []>} : vector<8x30xbf16>, vector<30x128xbf16>, vector<8x128xf32> -> vector<8x128xf32>
    %101 = arith.addf %99, %100 : vector<8x128xf32>
    %cst_33 = arith.constant dense<0.000000e+00> : vector<8x128xf32>
    %102 = tpu.matmul %43, %57, %cst_33 {dimension_numbers = #tpu.dot_dimension_numbers<[1], [0], [0], [1], [0, 0, 1, 1], [], []>} : vector<8x30xbf16>, vector<30x128xbf16>, vector<8x128xf32> -> vector<8x128xf32>
    %103 = arith.addf %101, %102 : vector<8x128xf32>
    %cst_34 = arith.constant dense<0.000000e+00> : vector<8x128xf32>
    %104 = tpu.matmul %49, %59, %cst_34 {dimension_numbers = #tpu.dot_dimension_numbers<[1], [0], [0], [1], [0, 0, 1, 1], [], []>} : vector<8x30xbf16>, vector<30x128xbf16>, vector<8x128xf32> -> vector<8x128xf32>
    %105 = arith.addf %103, %104 : vector<8x128xf32>
    %106 = arith.maximumf %96, %105 : vector<8x128xf32>
    %cst_35 = arith.constant dense<0.000000e+00> : vector<8x128xf32>
    %107 = tpu.matmul %31, %51, %cst_35 {dimension_numbers = #tpu.dot_dimension_numbers<[1], [0], [0], [1], [0, 0, 1, 1], [], []>} : vector<8x30xbf16>, vector<30x128xbf16>, vector<8x128xf32> -> vector<8x128xf32>
    %cst_36 = arith.constant dense<0.000000e+00> : vector<8x128xf32>
    %108 = tpu.matmul %37, %53, %cst_36 {dimension_numbers = #tpu.dot_dimension_numbers<[1], [0], [0], [1], [0, 0, 1, 1], [], []>} : vector<8x30xbf16>, vector<30x128xbf16>, vector<8x128xf32> -> vector<8x128xf32>
    %109 = arith.addf %107, %108 : vector<8x128xf32>
    %cst_37 = arith.constant dense<0.000000e+00> : vector<8x128xf32>
    %110 = tpu.matmul %43, %55, %cst_37 {dimension_numbers = #tpu.dot_dimension_numbers<[1], [0], [0], [1], [0, 0, 1, 1], [], []>} : vector<8x30xbf16>, vector<30x128xbf16>, vector<8x128xf32> -> vector<8x128xf32>
    %111 = arith.addf %109, %110 : vector<8x128xf32>
    %cst_38 = arith.constant dense<0.000000e+00> : vector<8x128xf32>
    %112 = tpu.matmul %49, %57, %cst_38 {dimension_numbers = #tpu.dot_dimension_numbers<[1], [0], [0], [1], [0, 0, 1, 1], [], []>} : vector<8x30xbf16>, vector<30x128xbf16>, vector<8x128xf32> -> vector<8x128xf32>
    %113 = arith.addf %111, %112 : vector<8x128xf32>
    %114 = arith.maximumf %106, %113 : vector<8x128xf32>
    %c0_39 = arith.constant 0 : index
    %c0_40 = arith.constant 0 : index
    %115 = vector.load %arg3[%c0_39, %c0_40] : memref<1x128xf32, #tpu.memory_space<vmem>>, vector<1x128xf32>
    %116 = vector.broadcast %115 : vector<1x128xf32> to vector<8x128xf32>
    %117 = arith.addf %114, %116 : vector<8x128xf32>
    %cst_41 = arith.constant 0.000000e+00 : f32
    %118 = vector.broadcast %cst_41 : f32 to vector<8x128xf32>
    %119 = arith.maximumf %117, %118 : vector<8x128xf32>
    %120 = arith.truncf %119 : vector<8x128xf32> to vector<8x128xbf16>
    %c0_42 = arith.constant 0 : index
    %c0_43 = arith.constant 0 : index
    %121 = vector.load %arg4[%c0_42, %c0_43] : memref<128x256xbf16, #tpu.memory_space<vmem>>, vector<128x256xbf16>
    %cst_44 = arith.constant dense<0.000000e+00> : vector<8x256xf32>
    %122 = tpu.matmul %120, %121, %cst_44 {dimension_numbers = #tpu.dot_dimension_numbers<[1], [0], [0], [1], [0, 0, 1, 1], [], []>} : vector<8x128xbf16>, vector<128x256xbf16>, vector<8x256xf32> -> vector<8x256xf32>
    %c0_45 = arith.constant 0 : index
    %c0_46 = arith.constant 0 : index
    %123 = vector.load %arg5[%c0_45, %c0_46] : memref<1x256xf32, #tpu.memory_space<vmem>>, vector<1x256xf32>
    %124 = vector.broadcast %123 : vector<1x256xf32> to vector<8x256xf32>
    %125 = arith.addf %122, %124 : vector<8x256xf32>
    %126 = vector.extract_strided_slice %125 {offsets = [0, 0], sizes = [8, 128], strides = [1, 1]} : vector<8x256xf32> to vector<8x128xf32>
    %cst_47 = arith.constant 0.000000e+00 : f32
    %127 = vector.broadcast %cst_47 : f32 to vector<8x128xf32>
    %128 = arith.maximumf %126, %127 : vector<8x128xf32>
    %129 = vector.extract_strided_slice %125 {offsets = [0, 128], sizes = [8, 128], strides = [1, 1]} : vector<8x256xf32> to vector<8x128xf32>
    %130 = arith.negf %129 : vector<8x128xf32>
    %131 = math.exp %130 : vector<8x128xf32>
    %cst_48 = arith.constant 1.000000e+00 : f32
    %132 = vector.broadcast %cst_48 : f32 to vector<8x128xf32>
    %133 = arith.addf %132, %131 : vector<8x128xf32>
    %134 = arith.divf %132, %133 : vector<8x128xf32>
    %135 = arith.subf %128, %119 : vector<8x128xf32>
    %136 = arith.mulf %134, %135 : vector<8x128xf32>
    %137 = arith.addf %119, %136 : vector<8x128xf32>
    %c0_49 = arith.constant 0 : index
    %c0_50 = arith.constant 0 : index
    %138 = vector.load %arg6[%c0_49, %c0_50] : memref<8x128xf32, #tpu.memory_space<vmem>>, vector<8x128xf32>
    tpu.vector_store %arg6[%c0_49, %c0_50], %137 {strides = array<i32>} : memref<8x128xf32, #tpu.memory_space<vmem>>, vector<8x128xf32>,
    return
  }
  func.func @transform_0(%arg0: i32) -> (i32, i32) {
    %c0_i32 = arith.constant 0 : i32
    %c0_i32_0 = arith.constant 0 : i32
    return %arg0, %c0_i32 : i32, i32
  }
  func.func @transform_1(%arg0: i32) -> (i32, i32, i32) {
    %c0_i32 = arith.constant 0 : i32
    %c0_i32_0 = arith.constant 0 : i32
    %c0_i32_1 = arith.constant 0 : i32
    %c0_i32_2 = arith.constant 0 : i32
    return %c0_i32, %c0_i32_0, %c0_i32_1 : i32, i32, i32
  }
  func.func @transform_2(%arg0: i32) -> (i32, i32) {
    %c0_i32 = arith.constant 0 : i32
    %c0_i32_0 = arith.constant 0 : i32
    %c0_i32_1 = arith.constant 0 : i32
    return %c0_i32, %c0_i32_0 : i32, i32
  }
  func.func @transform_3(%arg0: i32) -> (i32, i32) {
    %c0_i32 = arith.constant 0 : i32
    %c0_i32_0 = arith.constant 0 : i32
    %c0_i32_1 = arith.constant 0 : i32
    return %c0_i32, %c0_i32_0 : i32, i32
  }
  func.func @transform_4(%arg0: i32) -> (i32, i32) {
    %c0_i32 = arith.constant 0 : i32
    %c0_i32_0 = arith.constant 0 : i32
    %c0_i32_1 = arith.constant 0 : i32
    return %c0_i32, %c0_i32_0 : i32, i32
  }
  func.func @transform_5(%arg0: i32) -> (i32, i32) {
    %c0_i32 = arith.constant 0 : i32
    %c0_i32_0 = arith.constant 0 : i32
    return %arg0, %c0_i32 : i32, i32
  }
}

</mosaic_0001>

<bundles_post_ra>
// kernel: model_embeddings_forward.1
= control target key start
LH: loop header
LB: loop body
LE: loop exit
PB: predicated region body
PF: predicated region fallthrough
CT: control target
= control target key end

     0   :  { %10 = vsyncpa [#allocation3], 0  ;;  %s3178_s0 = inlined_call_operand.hbm [shape: s32[16,8], index: 0, kind: input, shape index: {}]   ;;  %s3179_s1 = inlined_call_operand.hbm [shape: bf16[5,30,128], index: 1, kind: input, shape index: {}]   ;;  %s3180_s2 = inlined_call_operand.vmem [shape: f32[1,128], index: 2, kind: input, shape index: {}]   ;;  %s3181_s3 = inlined_call_operand.hbm [shape: bf16[128,256], index: 3, kind: input, shape index: {}]   ;;  %s3182_s4 = inlined_call_operand.vmem [shape: f32[1,256], index: 4, kind: input, shape index: {}]   ;;  %s3183_s5 = inlined_call_operand.hbm [shape: f32[16,128], index: 5, kind: output, shape index: {}]  }
   0x1   :  { %12 = vsyncpa [#allocation3 + $0x1], 0 }
   0x2   :  { %13 = vsyncpa [#allocation6], 0 }
   0x3   :  { %14 = vsyncpa [#allocation4], 0 }
   0x4   :  { %16 = vsyncpa [#allocation4 + $0x1], 0  ;;  %s2670_s18 = smov 0   ;;  %s2672_s19 = smov 0  }
   0x5   :  { %s2674_s20 = smov 0   ;;  %s2676_s21 = smov 0  }
   0x6 LB: > { %s2691_s22 = sadd.s32 4294967295, %s2620_s21   ;;  %s1863_s23 = sadd.s32 4294967294, %s2620_s21   ;;  %s2620_s21 = sphi %s2676_s21, %s3203_s21   ;;  %s2616_s20 = sphi %s2674_s20, %s3202_s20   ;;  %s2612_s19 = sphi %s2672_s19, %s3201_s19   ;;  %s2608_s18 = sphi %s2670_s18, %s3200_s18  }
   0x7   : > { %p42_p0 = scmp.ne.s32.totalorder %s2612_s19, %s2608_s18  ;;  %p3184_p1 = scmp.eq.s32.totalorder %s2691_s22, 0 }
   0x8   : > { %p156_p3 = scmp.eq.s32.totalorder %s1863_s23, 1  ;;  %p1864_p5 = scmp.ge.s32.totalorder %s2620_s21, 1 }
   0x9   : > { %p2700_p4 = por %p3184_p1, %p42_p0  ;;  %p163_p7 = scmp.lt.s32.totalorder %s2620_s21, 3 }
   0xa   : > { %p2705_p6 = por %p156_p3, %p42_p0  ;;  %s2622_s27 = smov [#allocation5]  }
   0xb   : > { %s3187_s24 = scalar_select %p2700_p4, 1, 0 }
   0xc   : > { %s3188_s25 = scalar_select %p2705_p6, 1, 0 }
   0xd   : > { %p2710_p8 = pnand %p1864_p5, %p163_p7  ;;  %s175_s28 = sshll.u32 %s2622_s27, 4  ;;  %s2714_s28 = int_to_ptr.vmem [resolvable:$true] %s175_s28 }
   0xe   : > { %s2623_s30 = smov [#allocation7]   ;;  %s2464_s9 = scalar_lea.hbm %s3179_s1, 1280 }
   0xf   : > { %p2348_p9 = pneg %p2710_p8  ;;  %s191_s6 = sshll.u32 %s2623_s30, 4  ;;  %s2725_s6 = int_to_ptr.vmem [resolvable:$true] %s191_s6 }
  0x10   : > { %p2465_p12 = scmp.ne.s32.totalorder %s3179_s1, %s2464_s9  ;;  %p2471_p5 = scmp.lt.u32.totalorder %s2464_s9, %s3179_s1 }
  0x11   : > { %p2721_p11 = pnand %p2348_p9, %p3184_p1 }
  0x13   : > { %p2466_p13 = pneg %p2721_p11 }
  0x15   : > { %p2467_p0 = pnand %p2466_p13, %p2465_p12 }
  0x17   : > { %p2468_p3 = pneg %p2467_p0 }
  0x19   : > { %p2473_p7 = pnand %p2471_p5, %p2468_p3 }
  0x1b   : > { %2476 = shalt.err (!%p2473_p7)
}
  0x1c   : > { %s2477_s14 = scalar_lea.vmem %s2714_s28, 1280  ;;  %p2485_p2 = scmp.lt.s32.totalorder %s2714_s28, %s2714_s28 }
  0x1d   : > { %p2478_p9 = scmp.ne.s32.totalorder %s2714_s28, %s2477_s14  ;;  %p2486_p12 = scmp.lt.s32.totalorder %s2477_s14, %s2477_s14 }
  0x1f   : > { %p2480_p10 = pnand %p2478_p9, %p2466_p13  ;;  %p2487_p0 = por %p2486_p12, %p2485_p2 }
  0x21   : > { %p2481_p1 = pneg %p2480_p10 }
  0x23   : > { %p2488_p6 = pnand %p2487_p0, %p2481_p1 }
  0x25   : > { %2491 = shalt.err (!%p2488_p6)
}
  0x26   : > { %s2624_s15 = smov 64   ;;  %s2625_s16 = smov 4  }
  0x27   : > { %2351 = dma.hbm_to_vmem [thread:$0]  (!%p2721_p11), %s3179_s1, 1280, %s2714_s28, [#allocation6], %s2624_s15, %s2624_s15, %s2625_s16  }
  0x28   : > { %s2492_s7 = scalar_lea.hbm %s3181_s3, 2048 }
  0x29   : > { %p2493_p2 = scmp.ne.s32.totalorder %s3181_s3, %s2492_s7  ;;  %p2499_p10 = scmp.lt.u32.totalorder %s2492_s7, %s3181_s3 }
  0x2b   : > { %p2495_p1 = pnand %p2493_p2, %p2466_p13 }
  0x2d   : > { %p2496_p6 = pneg %p2495_p1 }
  0x2f   : > { %p2501_p3 = pnand %p2499_p10, %p2496_p6 }
  0x31   : > { %2504 = shalt.err (!%p2501_p3)
}
  0x32   : > { %s2505_s28 = scalar_lea.vmem %s2725_s6, 2048  ;;  %p2513_p12 = scmp.lt.s32.totalorder %s2725_s6, %s2725_s6 }
  0x33   : > { %p2506_p5 = scmp.ne.s32.totalorder %s2725_s6, %s2505_s28  ;;  %p2514_p0 = scmp.lt.s32.totalorder %s2505_s28, %s2505_s28 }
  0x35   : > { %p2508_p7 = pnand %p2506_p5, %p2466_p13  ;;  %p2515_p2 = por %p2514_p0, %p2513_p12 }
  0x37   : > { %p2509_p9 = pneg %p2508_p7 }
  0x39   : > { %p2516_p1 = pnand %p2515_p2, %p2509_p9 }
  0x3b   : > { %2519 = shalt.err (!%p2516_p1)
}
  0x3c   : > { %s2626_s12 = smov 128   ;;  %s2627_s13 = smov 8  }
  0x3d   : > { %2354 = dma.hbm_to_vmem [thread:$0]  (!%p2721_p11), %s3181_s3, 2048, %s2725_s6, [#allocation6], %s2626_s12, %s2626_s12, %s2627_s13  }
  0x3e   : > { %s2780_s16 = sadd.s32 1, %s2620_s21   ;;  %s29_s23 = sadd.s32 1, %s2616_s20 }
  0x3f   : > { %s26_s17 = ssub.s32 %s2620_s21, %s2780_s16  ;;  %p36_p6 = scmp.ne.s32.totalorder %s2616_s20, %s2612_s19 }
  0x40   : > { %p27_p13 = scmp.eq.s32.totalorder %s26_s17, 0  ;;  %p37_p10 = scmp.eq.s32.totalorder %s2620_s21, 0 }
  0x41   : > { %p3191_p5 = scmp.eq.s32.totalorder %s2691_s22, 1  ;;  %p2365_p9 = scmp.lt.s32.totalorder %s2620_s21, 2 }
  0x42   : > { %s2789_s27 = scalar_select %p27_p13, %s2616_s20, %s29_s23  }
  0x43   : > { %p38_p3 = por %p37_p10, %p36_p6  ;;  %p2793_p7 = por %p3191_p5, %p36_p6 }
  0x44   : > { %s208_s29 = sand.u32 1, %s2616_s20   ;;  %s1869_s6 = sshll.u32 %s2620_s21, 7 }
  0x45   : > { %s3192_s30 = scalar_select %p2793_p7, 1, 0 }
  0x46   : > { %s1868_s7 = sshll.u32 %s208_s29, 3  ;;  %s2803_s10 = scalar_lea.hbm %s3178_s0, %s1869_s6 }
  0x47   : > { %s212_s11 = scalar_lea.vmem [#allocation2], %s1868_s7  ;;  %p2807_p11 = pnand %p2365_p9, %p38_p3 }
  0x48   : > { %s219_s28 = sshll.u32 %s212_s11, 4  ;;  %s209_s13 = scalar_lea.sflag [#allocation3], %s208_s29  ;;  %s2805_s28 = int_to_ptr.vmem [resolvable:$true] %s219_s28 }
  0x49   : > { %s2520_s14 = scalar_lea.hbm %s2803_s10, 128  ;;  %p2522_p0 = pneg %p2807_p11 }
  0x4a   : > { %p2521_p12 = scmp.ne.s32.totalorder %s2803_s10, %s2520_s14  ;;  %s2525_s23 = scalar_lea.hbm %s3178_s0, 256 }
  0x4b   : > { %p2526_p13 = scmp.lt.u32.totalorder %s2803_s10, %s3178_s0  ;;  %p2527_p6 = scmp.lt.u32.totalorder %s2525_s23, %s2520_s14 }
  0x4c   : > { %p2523_p2 = pnand %p2522_p0, %p2521_p12  ;;  %p2529_p3 = scmp.lt.u32.totalorder %s2520_s14, %s2803_s10 }
  0x4d   : > { %p2528_p10 = por %p2527_p6, %p2526_p13 }
  0x4e   : > { %p2524_p1 = pneg %p2523_p2 }
  0x4f   : > { %p2530_p5 = por %p2529_p3, %p2528_p10 }
  0x51   : > { %p2531_p9 = pnand %p2530_p5, %p2524_p1 }
  0x53   : > { %2534 = shalt.err (!%p2531_p9)
}
  0x54   : > { %s2535_s29 = scalar_lea.vmem %s2805_s28, 128  ;;  %s2628_s8 = smov [#allocation2]  }
  0x55   : > { %p2536_p12 = scmp.ne.s32.totalorder %s2805_s28, %s2535_s29  ;;  %s2540_s9 = sshll.u32 %s2628_s8, 4  ;;  %s2541_s9 = int_to_ptr.vmem [resolvable:$false] %s2540_s9 }
  0x56   : > { %s2542_s11 = scalar_lea.vmem %s2541_s9, 256  ;;  %p2543_p4 = scmp.lt.s32.totalorder %s2805_s28, %s2541_s9 }
  0x57   : > { %p2538_p2 = pnand %p2536_p12, %p2522_p0  ;;  %p2544_p13 = scmp.lt.s32.totalorder %s2542_s11, %s2535_s29 }
  0x59   : > { %p2539_p7 = pneg %p2538_p2  ;;  %p2545_p6 = por %p2544_p13, %p2543_p4 }
  0x5b   : > { %p2546_p10 = pnand %p2545_p6, %p2539_p7 }
  0x5d   : > { %2549 = shalt.err (!%p2546_p10)
}
  0x5e   : > { %2358 = dma.hbm_to_vmem [thread:$0]  (!%p2807_p11), %s2803_s10, 128, %s2805_s28, %s209_s13  }
  0x5f   : > { %228 = sbr.rel (%p2710_p8) target bundleno = 888 (0x378), region = 40  ;;  %s2839_s14 = sand.u32 (!%p2710_p8), 1, %s2612_s19  }
  0x60   : > { %s1871_s15 = sshll.u32 (!%p2710_p8), %s2839_s14, 3  ;;  %s231_s17 = scalar_lea.sflag (!%p2710_p8), [#allocation3], %s2839_s14 }
  0x61   : > { %s234_s23 = scalar_lea.vmem (!%p2710_p8), [#allocation2], %s1871_s15  ;;  %p3194_p4 = scmp.ne.s32.totalorder (!%p2710_p8), %s3187_s24, 0 }
  0x66   : > { %2595 = dma.done.wait (%p3194_p4), %s231_s17, 128  }
  0x67   : > { %2597 = vsyncadd (%p3194_p4), %s231_s17, 4294967168  ;;  %p3195_p7 = scmp.eq.s32.totalorder %s2691_s22, 0 }
  0x69   : > { %2599 = dma.done.wait (%p3195_p7), [#allocation6], 3328   ;;  %p3196_p8 = pmov %p3195_p7 }
  0x6a   : > { %v2629_v0 = vmov 2   ;;  %v2630_v1 = vmov 1   ;;  %v2631_v2 = vmov 0.0   ;;  %v270_v3 = vld [vmem:[%s234_s23] sm:$0xff]  ;;  %v2855_v4 = vld [vmem:[#allocation5 + $0x20] sm:$0xff]   ;;  %vm368_vm0 = vcmask 1046528  }
  0x6b   : > { %2601 = vsyncadd (%p3196_p8), [#allocation6], 4294963968  ;;  %2419 = vset.pattern.permute.xlu1 %v2629_v0  ;;  %2417 = vset.pattern.permute.xlu0 %v2630_v1  ;;  %v2857_v5 = vld [vmem:[#allocation5 + $0x30] sm:$0xff]   ;;  %v2428_v6 = vld [vmem:[#allocation5 + $0x28] sm:$0x7f]   ;;  %v2632_v8 = vmov 3   ;;  %v271_v16 = vlaneseq }
  0x6c   : > { %2027 = vmatprep.subr.bf16.mxu1 %v2631_v2  ;;  %2043 = vmatprep.subr.bf16.mxu0 %v2631_v2  ;;  %v2429_v7 = vld [vmem:[#allocation5 + $0x38] sm:$0x7f]   ;;  %v2633_v9 = vmov 0   ;;  %v2864_v10 = vsel %vm368_vm0, %v2428_v6, 0  ;;  %vm2634_vm1 = vmmov 0   ;;  %v2635_v12 = vmov 4  }
  0x6d   : > { %288 = vperm.xlu1 %2419, %v270_v3   ;;  %281 = vperm.xlu0 %2417, %v270_v3   ;;  %v2867_v11 = vsel %vm368_vm0, %v2429_v7, 0  ;;  %v2636_v13 = vmov 5   ;;  %v2637_v14 = vmov 6   ;;  %v2638_v15 = vmov 7   ;;  %v2885_v22 = vld [vmem:[#allocation5 + $0x10] sm:$0xff]   ;;  %v2887_v23 = vld [vmem:[#allocation5 + $0x40] sm:$0xff]  }
  0x6e   : > { %2028 = vmatpush3.bf16.msra.mxu1 %v2855_v4  ;;  %2044 = vmatpush3.bf16.msra.mxu0 %v2857_v5  ;;  %v2879_v17 = vand.u32 127, %v271_v16  ;;  %vm364_vm4 = vcmask 244736   ;;  %v2432_v26 = vld [vmem:[#allocation5 + $0x18] sm:$0x7f]   ;;  %v2433_v27 = vld [vmem:[#allocation5 + $0x48] sm:$0x7f]  }
  0x6f   : > { %2029 = vmatprep.subr.bf16.mxu1 %v2631_v2  ;;  %2045 = vmatprep.subr.bf16.mxu0 %v2631_v2  ;;  %v2898_v30 = vsel %vm368_vm0, %v2432_v26, 0  ;;  %v2904_v31 = vsel %vm368_vm0, %v2433_v27, 0  ;;  %v2931_v36 = vld [vmem:[#allocation5] sm:$0xff]   ;;  %v2435_v37 = vld [vmem:[#allocation5 + $0x8] sm:$0x7f]   ;;  %s1940_s12 = sshll.u32 %s2691_s22, 7 }
  0x70   : > { %2031 = vmatprep.mubr.msk.bf16.mxu1 %vm2634_vm1, %v2631_v2  ;;  %2047 = vmatprep.mubr.msk.bf16.mxu0 %vm2634_vm1, %v2631_v2  ;;  %v2942_v38 = vsel %vm368_vm0, %v2435_v37, 0  ;;  %v2436_v51 = vld [vmem:[#allocation7] ss:$8 sps:$4 sm:$0xff]   ;;  %v2438_v52 = vld [vmem:[#allocation7 + $0x4] ss:$8 sps:$4 sm:$0xff]   ;;  %s268_s13 = scalar_lea.vmem [#allocation8], %s1871_s15  ;;  %s3134_s8 = scalar_lea.hbm %s3183_s5, %s1940_s12 }
  0x71   : > { %2420 = vset.pattern.permute.xlu1 %v2632_v8  ;;  %2418 = vset.pattern.permute.xlu0 %v2633_v9  ;;  %v2441_v53 = vld [vmem:[#allocation7 + $0x14] ss:$8 sps:$4 sm:$0xff]   ;;  %v2439_v54 = vld [vmem:[#allocation7 + $0x10] ss:$8 sps:$4 sm:$0xff]   ;;  %v2444_v55 = vld [vmem:[#allocation7 + $0x24] ss:$8 sps:$4 sm:$0xff]  }
  0x72   : > { %295 = vperm.xlu1 %2420, %v270_v3   ;;  %274 = vperm.xlu0 %2418, %v270_v3   ;;  %v2442_v56 = vld [vmem:[#allocation7 + $0x20] ss:$8 sps:$4 sm:$0xff]   ;;  %v2447_v57 = vld [vmem:[#allocation7 + $0x34] ss:$8 sps:$4 sm:$0xff]   ;;  %v2445_v58 = vld [vmem:[#allocation7 + $0x30] ss:$8 sps:$4 sm:$0xff]  }
  0x73   : > { %2030 = vmatpush3.bf16.msra.mxu1 %v2864_v10  ;;  %2046 = vmatpush3.bf16.msra.mxu0 %v2867_v11  ;;  %v2450_v59 = vld [vmem:[#allocation7 + $0x44] ss:$8 sps:$4 sm:$0xff]   ;;  %v2453_v6 = vld [vmem:[#allocation7 + $0x54] ss:$8 sps:$4 sm:$0xff]   ;;  %v2451_v7 = vld [vmem:[#allocation7 + $0x50] ss:$8 sps:$4 sm:$0xff]  }
  0x74   : > { %2035 = vmatprep.subr.bf16.mxu1 %v2631_v2  ;;  %2051 = vmatprep.subr.bf16.mxu0 %v2631_v2  ;;  %v2456_v8 = vld [vmem:[#allocation7 + $0x64] ss:$8 sps:$4 sm:$0xff]   ;;  %s1774_s7 = sshll.u32 %s268_s13, 4  ;;  %s1761_s9 = scalar_lea.sflag [#allocation4], %s2839_s14  ;;  %s3136_s7 = int_to_ptr.vmem [resolvable:$true] %s1774_s7 }
  0x75   : > { %s2550_s11 = scalar_lea.vmem %s3136_s7, 128  ;;  %p3197_p0 = scmp.ne.s32.totalorder %s3192_s30, 0 }
  0x76   : > { %2421 = vset.pattern.permute.xlu1 %v2635_v12  ;;  %2422 = vset.pattern.permute.xlu0 %v2636_v13  ;;  %p2551_p11 = scmp.ne.s32.totalorder %s3136_s7, %s2550_s11  ;;  %s2639_s22 = smov [#allocation8]  }
  0x77   : > { %302 = vperm.xlu1 %2421, %v270_v3   ;;  %309 = vperm.xlu0 %2422, %v270_v3   ;;  %s2554_s15 = sshll.u32 %s2639_s22, 4  ;;  %s2555_s15 = int_to_ptr.vmem [resolvable:$false] %s2554_s15 }
  0x78   : > { %p2552_p1 = pnand %p2551_p11, %p3197_p0  ;;  %s2556_s17 = scalar_lea.vmem %s2555_s15, 256 }
  0x79   : > { %p2557_p5 = scmp.lt.s32.totalorder %s3136_s7, %s2555_s15  ;;  %p2558_p9 = scmp.lt.s32.totalorder %s2556_s17, %s2550_s11 }
  0x7a   : > { %p2553_p3 = pneg %p2552_p1 }
  0x7b   : > { %2423 = vset.pattern.permute.xlu1 %v2637_v14  ;;  %2425 = vset.pattern.permute.xlu0 %v2638_v15  ;;  %p2559_p12 = por %p2558_p9, %p2557_p5 }
  0x7c   : > { %316 = vperm.xlu1 %2423, %v270_v3  }
  0x7d   : > { %p2560_p2 = pnand %p2559_p12, %p2553_p3 }
  0x80   : > { %2424 = vset.pattern.permute.xlu1 %v2638_v15 }
  0x81   : > { %323 = vperm.xlu1 %2424, %v270_v3   ;;  %v2448_v3 = vld [vmem:[#allocation7 + $0x40] ss:$8 sps:$4 sm:$0xff]  }
  0xec   : > { %v289_v18 = vpop.permute.xlu1 %288  ;;  %v282_v19 = vpop.permute.xlu0 %281 }
  0xed   : > { %vm290_vm2 = vcmp.eq.s32.totalorder %v289_v18, %v2879_v17  ;;  %vm283_vm3 = vcmp.eq.s32.totalorder %v282_v19, %v2879_v17 }
  0xee   : > { %v1877_v20 = vsel %vm290_vm2, 1.0, %v2631_v2  ;;  %v1876_v21 = vsel %vm283_vm3, 1.0, %v2631_v2 }
  0xef   : > { %v2889_v24 = vpack.c.bf16 %v1877_v20, %v1877_v20  ;;  %v286_v25 = vpack.c.bf16 %v1876_v21, %v1876_v21 }
  0xf1   : > { %2032 = vmatmul.mubr.msk.bf16.vlgmr.msra.gmra.mrb[0].mxu1 %vm364_vm4, %v286_v25  ;;  %2048 = vmatmul.mubr.msk.bf16.vlgmr.msra.gmra.mrb[0].mxu0 %vm364_vm4, %v2889_v24  ;;  %v296_v28 = vpop.permute.xlu1 %295  ;;  %v275_v29 = vpop.permute.xlu0 %274 }
  0xf2   : > { %2036 = vmatpush3.bf16.msra.mxu1 %v2885_v22  ;;  %2052 = vmatpush3.bf16.msra.mxu0 %v2887_v23  ;;  %vm297_vm5 = vcmp.eq.s32.totalorder %v296_v28, %v2879_v17  ;;  %vm276_vm6 = vcmp.eq.s32.totalorder %v275_v29, %v2879_v17 }
  0xf3   : > { %2037 = vmatprep.subr.bf16.mxu1 %v2631_v2  ;;  %2053 = vmatprep.subr.bf16.mxu0 %v2631_v2  ;;  %v1878_v32 = vsel %vm297_vm5, 1.0, %v2631_v2  ;;  %v1875_v33 = vsel %vm276_vm6, 1.0, %v2631_v2 }
  0xf4   : > { %2039 = vmatprep.mubr.msk.bf16.mxu1 %vm2634_vm1, %v2631_v2  ;;  %2055 = vmatprep.mubr.msk.bf16.mxu0 %vm2634_vm1, %v2631_v2  ;;  %v2916_v34 = vpack.c.bf16 %v1878_v32, %v1878_v32  ;;  %v279_v35 = vpack.c.bf16 %v1875_v33, %v1875_v33 }
  0xf6   : > { %2038 = vmatpush3.bf16.msra.mxu1 %v2898_v30  ;;  %2054 = vmatpush3.bf16.msra.mxu0 %v2904_v31  ;;  %v303_v39 = vpop.permute.xlu1 %302  ;;  %v310_v42 = vpop.permute.xlu0 %309 }
  0xf7   : > { %2059 = vmatprep.subr.bf16.mxu1 %v2631_v2  ;;  %2099 = vmatprep.subr.bf16.mxu0 %v2631_v2  ;;  %vm304_vm7 = vcmp.eq.s32.totalorder %v303_v39, %v2879_v17  ;;  %vm311_vm8 = vcmp.eq.s32.totalorder %v310_v42, %v2879_v17  ;;  %v1619_v42 = vshrl.u32 %v271_v16, 7 }
  0xf8   : > { %v1879_v40 = vsel %vm304_vm7, 1.0, %v2631_v2  ;;  %v1880_v43 = vsel %vm311_vm8, 1.0, %v2631_v2 }
  0xf9   : > { %v2985_v41 = vpack.c.bf16 %v1879_v40, %v1879_v40  ;;  %v3005_v44 = vpack.c.bf16 %v1880_v43, %v1880_v43  ;;  %v1624_v43 = vsub.s32 1, %v1619_v42 }
  0xfb   : > { %v317_v45 = vpop.permute.xlu1 %316 }
  0xfc   : > { %vm318_vm9 = vcmp.eq.s32.totalorder %v317_v45, %v2879_v17 }
  0xfd   : > { %2040 = vmatmul.mubr.msk.bf16.vlgmr.msra.gmra.mrb[0].mxu1 %vm364_vm4, %v279_v35  ;;  %2056 = vmatmul.mubr.msk.bf16.vlgmr.msra.gmra.mrb[0].mxu0 %vm364_vm4, %v2916_v34  ;;  %v1881_v46 = vsel %vm318_vm9, 1.0, %v2631_v2 }
  0xfe   : > { %2060 = vmatpush3.bf16.msra.mxu1 %v2885_v22  ;;  %2100 = vmatpush3.bf16.msra.mxu0 %v2885_v22  ;;  %v321_v47 = vpack.c.bf16 %v1881_v46, %v1881_v46 }
  0xff   : > { %2061 = vmatprep.subr.bf16.mxu1 %v2631_v2  ;;  %2101 = vmatprep.subr.bf16.mxu0 %v2631_v2 }
 0x100   : > { %2063 = vmatprep.mubr.msk.bf16.mxu1 %vm2634_vm1, %v2631_v2  ;;  %2103 = vmatprep.mubr.msk.bf16.mxu0 %vm2634_vm1, %v2631_v2  ;;  %v324_v48 = vpop.permute.xlu1 %323 }
 0x101   : > { %vm325_vm10 = vcmp.eq.s32.totalorder %v324_v48, %v2879_v17 }
 0x102   : > { %2062 = vmatpush3.bf16.msra.mxu1 %v2898_v30  ;;  %2102 = vmatpush3.bf16.msra.mxu0 %v2898_v30  ;;  %v1882_v49 = vsel %vm325_vm10, 1.0, %v2631_v2 }
 0x103   : > { %2067 = vmatprep.subr.bf16.mxu1 %v2631_v2  ;;  %2107 = vmatprep.subr.bf16.mxu0 %v2631_v2  ;;  %v328_v50 = vpack.c.bf16 %v1882_v49, %v1882_v49 }
 0x105   : > { %2064 = vmatmul.mubr.msk.bf16.vlgmr.msra.gmra.mrb[4].mxu1 %vm364_vm4, %v286_v25  ;;  %2104 = vmatmul.mubr.msk.bf16.vlgmr.msra.gmra.mrb[4].mxu0 %vm364_vm4, %v2889_v24 }
 0x106   : > { %2068 = vmatpush3.bf16.msra.mxu1 %v2931_v36  ;;  %2108 = vmatpush3.bf16.msra.mxu0 %v2931_v36 }
 0x107   : > { %2069 = vmatprep.subr.bf16.mxu1 %v2631_v2  ;;  %2109 = vmatprep.subr.bf16.mxu0 %v2631_v2 }
 0x108   : > { %2071 = vmatprep.mubr.msk.bf16.mxu1 %vm2634_vm1, %v2631_v2  ;;  %2111 = vmatprep.mubr.msk.bf16.mxu0 %vm2634_vm1, %v2631_v2 }
 0x10a   : > { %2070 = vmatpush3.bf16.msra.mxu1 %v2942_v38  ;;  %2110 = vmatpush3.bf16.msra.mxu0 %v2942_v38 }
 0x10b   : > { %2075 = vmatprep.subr.bf16.mxu1 %v2631_v2  ;;  %2115 = vmatprep.subr.bf16.mxu0 %v2631_v2 }
 0x111   : > { %2072 = vmatmul.mubr.msk.bf16.vlgmr.msra.gmra.mrb[4].mxu1 %vm364_vm4, %v279_v35  ;;  %2112 = vmatmul.mubr.msk.bf16.vlgmr.msra.gmra.mrb[4].mxu0 %vm364_vm4, %v286_v25 }
 0x112   : > { %2076 = vmatpush3.bf16.msra.mxu1 %v2855_v4  ;;  %2116 = vmatpush3.bf16.msra.mxu0 %v2855_v4 }
 0x113   : > { %2077 = vmatprep.subr.bf16.mxu1 %v2631_v2  ;;  %2117 = vmatprep.subr.bf16.mxu0 %v2631_v2 }
 0x114   : > { %2079 = vmatprep.mubr.msk.bf16.mxu1 %vm2634_vm1, %v2631_v2  ;;  %2119 = vmatprep.mubr.msk.bf16.mxu0 %vm2634_vm1, %v2631_v2 }
 0x116   : > { %2078 = vmatpush3.bf16.msra.mxu1 %v2864_v10  ;;  %2118 = vmatpush3.bf16.msra.mxu0 %v2864_v10 }
 0x117   : > { %2083 = vmatprep.subr.bf16.mxu1 %v2631_v2  ;;  %2123 = vmatprep.subr.bf16.mxu0 %v2631_v2 }
 0x11d   : > { %2080 = vmatmul.mubr.msk.bf16.vlgmr.msra.gmra.mrb[4].mxu1 %vm364_vm4, %v2889_v24  ;;  %2120 = vmatmul.mubr.msk.bf16.vlgmr.msra.gmra.mrb[4].mxu0 %vm364_vm4, %v2916_v34 }
 0x11e   : > { %2084 = vmatpush3.bf16.msra.mxu1 %v2857_v5  ;;  %2124 = vmatpush3.bf16.msra.mxu0 %v2857_v5 }
 0x11f   : > { %2085 = vmatprep.subr.bf16.mxu1 %v2631_v2  ;;  %2125 = vmatprep.subr.bf16.mxu0 %v2631_v2 }
 0x120   : > { %2087 = vmatprep.mubr.msk.bf16.mxu1 %vm2634_vm1, %v2631_v2  ;;  %2127 = vmatprep.mubr.msk.bf16.mxu0 %vm2634_vm1, %v2631_v2 }
 0x122   : > { %2086 = vmatpush3.bf16.msra.mxu1 %v2867_v11  ;;  %2126 = vmatpush3.bf16.msra.mxu0 %v2867_v11 }
 0x123   : > { %2091 = vmatprep.subr.bf16.mxu1 %v2631_v2  ;;  %2131 = vmatprep.subr.bf16.mxu0 %v2631_v2 }
 0x129   : > { %2088 = vmatmul.mubr.msk.bf16.vlgmr.msra.gmra.mrb[4].mxu1 %vm364_vm4, %v2916_v34  ;;  %2128 = vmatmul.mubr.msk.bf16.vlgmr.msra.gmra.mrb[4].mxu0 %vm364_vm4, %v2985_v41 }
 0x12a   : > { %2092 = vmatpush3.bf16.msra.mxu1 %v2887_v23  ;;  %2132 = vmatpush3.bf16.msra.mxu0 %v2887_v23 }
 0x12b   : > { %2093 = vmatprep.subr.bf16.mxu1 %v2631_v2  ;;  %2133 = vmatprep.subr.bf16.mxu0 %v2631_v2 }
 0x12c   : > { %2095 = vmatprep.mubr.msk.bf16.mxu1 %vm2634_vm1, %v2631_v2  ;;  %2135 = vmatprep.mubr.msk.bf16.mxu0 %vm2634_vm1, %v2631_v2 }
 0x12e   : > { %2094 = vmatpush3.bf16.msra.mxu1 %v2904_v31  ;;  %2134 = vmatpush3.bf16.msra.mxu0 %v2904_v31 }
 0x12f   : > { %2139 = vmatprep.subr.bf16.mxu1 %v2631_v2  ;;  %2179 = vmatprep.subr.bf16.mxu0 %v2631_v2 }
 0x135   : > { %2096 = vmatmul.mubr.msk.bf16.vlgmr.msra.gmra.mrb[4].mxu1 %vm364_vm4, %v2985_v41  ;;  %2136 = vmatmul.mubr.msk.bf16.vlgmr.msra.gmra.mrb[4].mxu0 %vm364_vm4, %v3005_v44 }
 0x136   : > { %2140 = vmatpush3.bf16.msra.mxu1 %v2885_v22  ;;  %2180 = vmatpush3.bf16.msra.mxu0 %v2885_v22 }
 0x137   : > { %2141 = vmatprep.subr.bf16.mxu1 %v2631_v2  ;;  %2181 = vmatprep.subr.bf16.mxu0 %v2631_v2 }
 0x138   : > { %2143 = vmatprep.mubr.msk.bf16.mxu1 %vm2634_vm1, %v2631_v2  ;;  %2183 = vmatprep.mubr.msk.bf16.mxu0 %vm2634_vm1, %v2631_v2 }
 0x13a   : > { %2142 = vmatpush3.bf16.msra.mxu1 %v2898_v30  ;;  %2182 = vmatpush3.bf16.msra.mxu0 %v2898_v30 }
 0x13b   : > { %2147 = vmatprep.subr.bf16.mxu1 %v2631_v2  ;;  %2187 = vmatprep.subr.bf16.mxu0 %v2631_v2 }
 0x13d   : > { %2144 = vmatmul.mubr.msk.bf16.vlgmr.msra.gmra.mrb[8].mxu1 %vm364_vm4, %v2916_v34  ;;  %2184 = vmatmul.mubr.msk.bf16.vlgmr.msra.gmra.mrb[8].mxu0 %vm364_vm4, %v2985_v41 }
 0x13e   : > { %2148 = vmatpush3.bf16.msra.mxu1 %v2931_v36  ;;  %2188 = vmatpush3.bf16.msra.mxu0 %v2931_v36 }
 0x13f   : > { %2149 = vmatprep.subr.bf16.mxu1 %v2631_v2  ;;  %2189 = vmatprep.subr.bf16.mxu0 %v2631_v2 }
 0x140   : > { %2151 = vmatprep.mubr.msk.bf16.mxu1 %vm2634_vm1, %v2631_v2  ;;  %2191 = vmatprep.mubr.msk.bf16.mxu0 %vm2634_vm1, %v2631_v2 }
 0x142   : > { %2150 = vmatpush3.bf16.msra.mxu1 %v2942_v38  ;;  %2190 = vmatpush3.bf16.msra.mxu0 %v2942_v38 }
 0x143   : > { %2155 = vmatprep.subr.bf16.mxu1 %v2631_v2  ;;  %2195 = vmatprep.subr.bf16.mxu0 %v2631_v2 }
 0x149   : > { %2152 = vmatmul.mubr.msk.bf16.vlgmr.msra.gmra.mrb[8].mxu1 %vm364_vm4, %v2889_v24  ;;  %2192 = vmatmul.mubr.msk.bf16.vlgmr.msra.gmra.mrb[8].mxu0 %vm364_vm4, %v2916_v34  ;;  %v1921_v34 = vld [vmem:[%s3180_s2] ss:$0 sm:$0xff] }
 0x14a   : > { %2156 = vmatpush3.bf16.msra.mxu1 %v2855_v4  ;;  %2196 = vmatpush3.bf16.msra.mxu0 %v2855_v4 }
 0x14b   : > { %2157 = vmatprep.subr.bf16.mxu1 %v2631_v2  ;;  %2197 = vmatprep.subr.bf16.mxu0 %v2631_v2 }
 0x14c   : > { %2159 = vmatprep.mubr.msk.bf16.mxu1 %vm2634_vm1, %v2631_v2  ;;  %2199 = vmatprep.mubr.msk.bf16.mxu0 %vm2634_vm1, %v2631_v2 }
 0x14e   : > { %2158 = vmatpush3.bf16.msra.mxu1 %v2864_v10  ;;  %2198 = vmatpush3.bf16.msra.mxu0 %v2864_v10 }
 0x14f   : > { %2163 = vmatprep.subr.bf16.mxu1 %v2631_v2  ;;  %2203 = vmatprep.subr.bf16.mxu0 %v2631_v2 }
 0x155   : > { %2160 = vmatmul.mubr.msk.bf16.vlgmr.msra.gmra.mrb[8].mxu1 %vm364_vm4, %v2985_v41  ;;  %2200 = vmatmul.mubr.msk.bf16.vlgmr.msra.gmra.mrb[8].mxu0 %vm364_vm4, %v3005_v44 }
 0x156   : > { %2164 = vmatpush3.bf16.msra.mxu1 %v2857_v5  ;;  %2204 = vmatpush3.bf16.msra.mxu0 %v2857_v5 }
 0x157   : > { %2165 = vmatprep.subr.bf16.mxu1 %v2631_v2  ;;  %2205 = vmatprep.subr.bf16.mxu0 %v2631_v2 }
 0x158   : > { %2167 = vmatprep.mubr.msk.bf16.mxu1 %vm2634_vm1, %v2631_v2  ;;  %2207 = vmatprep.mubr.msk.bf16.mxu0 %vm2634_vm1, %v2631_v2 }
 0x15a   : > { %2166 = vmatpush3.bf16.msra.mxu1 %v2867_v11  ;;  %2206 = vmatpush3.bf16.msra.mxu0 %v2867_v11 }
 0x15b   : > { %2171 = vmatprep.subr.bf16.mxu1 %v2631_v2  ;;  %2211 = vmatprep.subr.bf16.mxu0 %v2631_v2 }
 0x161   : > { %2168 = vmatmul.mubr.msk.bf16.vlgmr.msra.gmra.mrb[8].mxu1 %vm364_vm4, %v3005_v44  ;;  %2208 = vmatmul.mubr.msk.bf16.vlgmr.msra.gmra.mrb[8].mxu0 %vm364_vm4, %v321_v47 }
 0x162   : > { %2172 = vmatpush3.bf16.msra.mxu1 %v2887_v23  ;;  %2212 = vmatpush3.bf16.msra.mxu0 %v2887_v23 }
 0x163   : > { %2173 = vmatprep.subr.bf16.mxu1 %v2631_v2  ;;  %2213 = vmatprep.subr.bf16.mxu0 %v2631_v2 }
 0x164   : > { %2175 = vmatprep.mubr.msk.bf16.mxu1 %vm2634_vm1, %v2631_v2  ;;  %2215 = vmatprep.mubr.msk.bf16.mxu0 %vm2634_vm1, %v2631_v2 }
 0x166   : > { %2174 = vmatpush3.bf16.msra.mxu1 %v2904_v31  ;;  %2214 = vmatpush3.bf16.msra.mxu0 %v2904_v31 }
 0x167   : > { %2219 = vmatprep.subr.bf16.mxu1 %v2631_v2  ;;  %1708 = vmatprep.subr.bf16.mxu0 %v2438_v52  ;;  %v1620_v52 = vsub.s32 0, %v1619_v42 }
 0x16d   : > { %2176 = vmatmul.mubr.msk.bf16.vlgmr.msra.gmra.mrb[8].mxu1 %vm364_vm4, %v321_v47  ;;  %2216 = vmatmul.mubr.msk.bf16.vlgmr.msra.gmra.mrb[8].mxu0 %vm364_vm4, %v328_v50 }
 0x16e   : > { %2220 = vmatpush3.bf16.msra.mxu1 %v2885_v22  ;;  %2223 = vmatprep.mubr.msk.bf16.mxu1 %vm2634_vm1, %v2631_v2 }
 0x16f   : > { %2221 = vmatprep.subr.bf16.mxu1 %v2631_v2  ;;  %1740 = vmatprep.mubr.bf16.mxu0 %v2633_v9  ;;  %v2454_v9 = vld [vmem:[#allocation7 + $0x60] ss:$8 sps:$4 sm:$0xff]  }
 0x170   : > { %1709 = vmatpush1.bf16.msra.mxu0 %v2436_v51 }
 0x171   : > { %1710 = vmatprep.subr.bf16.mxu0 %v2441_v53 }
 0x172   : > { %2222 = vmatpush3.bf16.msra.mxu1 %v2898_v30 }
 0x173   : > { %2227 = vmatprep.subr.bf16.mxu1 %v2631_v2 }
 0x174   : > { %1711 = vmatpush1.bf16.msra.mxu0 %v2439_v54 }
 0x175   : > { %2224 = vmatmul.mubr.msk.bf16.vlgmr.msra.gmra.mrb[12].mxu1 %vm364_vm4, %v3005_v44  ;;  %1712 = vmatprep.subr.bf16.mxu0 %v2444_v55  ;;  %v1616_v44 = vld [vmem:[%s3182_s4] sm:$0x3] }
 0x176   : > { %2228 = vmatpush3.bf16.msra.mxu1 %v2931_v36  ;;  %2231 = vmatprep.mubr.msk.bf16.mxu1 %vm2634_vm1, %v2631_v2  ;;  %v1625_v45 = vrot.slane %v1616_v44, %v1624_v43  ;;  %v1621_v54 = vrot.slane %v1616_v44, %v1620_v52 }
 0x177   : > { %2229 = vmatprep.subr.bf16.mxu1 %v2631_v2 }
 0x178   : > { %1713 = vmatpush1.bf16.msra.mxu0 %v2442_v56 }
 0x179   : > { %1714 = vmatprep.subr.bf16.mxu0 %v2447_v57 }
 0x17a   : > { %2230 = vmatpush3.bf16.msra.mxu1 %v2942_v38 }
 0x17b   : > { %2235 = vmatprep.subr.bf16.mxu1 %v2631_v2 }
 0x17c   : > { %1715 = vmatpush1.bf16.msra.mxu0 %v2445_v58 }
 0x17d   : > { %1716 = vmatprep.subr.bf16.mxu0 %v2450_v59 }
 0x180   : > { %1717 = vmatpush1.bf16.msra.mxu0 %v2448_v3 }
 0x181   : > { %2232 = vmatmul.mubr.msk.bf16.vlgmr.msra.gmra.mrb[12].mxu1 %vm364_vm4, %v2985_v41  ;;  %1718 = vmatprep.subr.bf16.mxu0 %v2453_v6 }
 0x182   : > { %2236 = vmatpush3.bf16.msra.mxu1 %v2855_v4  ;;  %2239 = vmatprep.mubr.msk.bf16.mxu1 %vm2634_vm1, %v2631_v2 }
 0x183   : > { %2237 = vmatprep.subr.bf16.mxu1 %v2631_v2 }
 0x184   : > { %1719 = vmatpush1.bf16.msra.mxu0 %v2451_v7 }
 0x185   : > { %1720 = vmatprep.subr.bf16.mxu0 %v2456_v8 }
 0x186   : > { %2238 = vmatpush3.bf16.msra.mxu1 %v2864_v10  ;;  %v2459_v10 = vld [vmem:[#allocation7 + $0x74] ss:$8 sps:$4 sm:$0xff]  }
 0x187   : > { %2243 = vmatprep.subr.bf16.mxu1 %v2631_v2 }
 0x188   : > { %1721 = vmatpush1.bf16.msra.mxu0 %v2454_v9 }
 0x189   : > { %1722 = vmatprep.subr.bf16.mxu0 %v2459_v10 }
 0x18d   : > { %2240 = vmatmul.mubr.msk.bf16.vlgmr.msra.gmra.mrb[12].mxu1 %vm364_vm4, %v321_v47 }
 0x18e   : > { %2244 = vmatpush3.bf16.msra.mxu1 %v2857_v5  ;;  %2247 = vmatprep.mubr.msk.bf16.mxu1 %vm2634_vm1, %v2631_v2 }
 0x18f   : > { %2245 = vmatprep.subr.bf16.mxu1 %v2631_v2 }
 0x192   : > { %2246 = vmatpush3.bf16.msra.mxu1 %v2867_v11  ;;  %v2457_v11 = vld [vmem:[#allocation7 + $0x70] ss:$8 sps:$4 sm:$0xff]  }
 0x193   : > { %1723 = vmatpush1.bf16.msra.mxu0 %v2457_v11 }
 0x199   : > { %2248 = vmatmul.mubr.msk.bf16.vlgmr.msra.gmra.mrb[12].mxu1 %vm364_vm4, %v328_v50 }
 0x1d0   : > { %v463_v60 = vpop.f32.mrb[0].mxu1  ;;  %v578_v61 = vpop.f32.mrb[0].mxu0 }
 0x1d1   : > { %v2251_v62 = vadd.f32 %v578_v61, %v463_v60  ;;  %v2041_v63 = vpop.f32.mrb[1].mxu1  ;;  %v2057_v0 = vpop.f32.mrb[1].mxu0 }
 0x1d2   : > { %v466_v1 = vpop.f32.mrb[2].mxu1  ;;  %v581_v2 = vpop.f32.mrb[2].mxu0 }
 0x1d3   : > { %v2042_v4 = vpop.f32.mrb[3].mxu1  ;;  %v2058_v5 = vpop.f32.mrb[3].mxu0 }
 0x208   : > { %v798_v12 = vpop.f32.mrb[4].mxu1  ;;  %v1005_v13 = vpop.f32.mrb[4].mxu0 }
 0x209   : > { %v805_v14 = vmax.f32 %v2251_v62, %v798_v12  ;;  %v2097_v15 = vpop.f32.mrb[5].mxu1  ;;  %v2137_v17 = vpop.f32.mrb[5].mxu0 }
 0x20a   : > { %v801_v18 = vpop.f32.mrb[6].mxu1  ;;  %v1008_v19 = vpop.f32.mrb[6].mxu0 }
 0x20b   : > { %v1012_v20 = vmax.f32 %v805_v14, %v1005_v13  ;;  %v2098_v21 = vpop.f32.mrb[7].mxu1  ;;  %v2138_v22 = vpop.f32.mrb[7].mxu0 }
 0x240   : > { %v1212_v23 = vpop.f32.mrb[8].mxu1  ;;  %v1419_v24 = vpop.f32.mrb[8].mxu0 }
 0x241   : > { %v1219_v25 = vmax.f32 %v1012_v20, %v1212_v23  ;;  %v2177_v26 = vpop.f32.mrb[9].mxu1  ;;  %v2217_v27 = vpop.f32.mrb[9].mxu0 }
 0x242   : > { %v1215_v28 = vpop.f32.mrb[10].mxu1  ;;  %v1422_v29 = vpop.f32.mrb[10].mxu0 }
 0x243   : > { %v1426_v30 = vmax.f32 %v1219_v25, %v1419_v24  ;;  %v2178_v31 = vpop.f32.mrb[11].mxu1  ;;  %v2218_v32 = vpop.f32.mrb[11].mxu0 }
 0x26c   : > { %v1582_v33 = vpop.f32.mrb[12].mxu1 }
 0x26d   : > { %v1589_v35 = vmax.f32 %v1426_v30, %v1582_v33  ;;  %v2249_v36 = vpop.f32.mrb[13].mxu1 }
 0x26e   : > { %v1585_v37 = vpop.f32.mrb[14].mxu1 }
 0x26f   : > { %v1597_v38 = vadd.f32 %v1921_v34, %v1589_v35  ;;  %v2250_v39 = vpop.f32.mrb[15].mxu1 }
 0x271   : > { %v1598_v40 = vmax.f32 %v1597_v38, 0.0 }
 0x273   : > { %v1599_v41 = vpack.c.bf16 %v1598_v40, %v1598_v40 }
 0x275   : > { %1741 = vmatmul.mubr.bf16.vlgmr.msra.gmra.mrb[12].mxu0 %v1599_v41 }
 0x348   : > { %v1742_v46 = vpop.f32.mrb[12].mxu0 }
 0x349   : > { %v1744_v47 = vpop.f32.mrb[13].mxu0  ;;  %v1743_v55 = vadd.f32 %v1742_v46, %v1621_v54 }
 0x34a   : > { %v1745_v48 = vadd.f32 %v1744_v47, %v1625_v45  ;;  %v1746_v49 = vpop.f32.mrb[14].mxu0 }
 0x34b   : > { %v1747_v50 = vpop.f32.mrb[15].mxu0  ;;  %v1749_v56 = vmax.f32 %v1743_v55, 0.0 }
 0x34c   : > { %v1938_v51 = vmul.f32 -1.442695, %v1745_v48 }
 0x34d   : > { %v1756_v57 = vsub.f32 %v1749_v56, %v1598_v40 }
 0x34e   : > { %2460 = vpow2.f32 %v1938_v51 }
 0x358   : > { %v2461_v53 = vpop.eup %2460 }
 0x359   : > { %v1753_v16 = vadd.f32 1.0, %v2461_v53 }
 0x35b   : > { %2462 = vrcp.f32 %v1753_v16 }
 0x365   : > { %v2463_v58 = vpop.eup %2462 }
 0x366   : > { %v1757_v59 = vmul.f32 %v2463_v58, %v1756_v57 }
 0x368   : > { %v1758_v60 = vadd.f32 %v1757_v59, %v1598_v40 }
 0x36a   : > { %1759 = vst [vmem:[%s268_s13] sm:$0xff] %v1758_v60 }
 0x36b   : > { %2563 = shalt.err (!%p2560_p2)
}
 0x36c   : > { %s2564_s14 = scalar_lea.hbm %s3134_s8, 128  ;;  %s2568_s26 = scalar_lea.hbm %s3183_s5, 256 }
 0x36d   : > { %p2565_p13 = scmp.ne.s32.totalorder %s3134_s8, %s2564_s14  ;;  %p2569_p4 = scmp.lt.u32.totalorder %s3134_s8, %s3183_s5 }
 0x36e   : > { %p2570_p7 = scmp.lt.u32.totalorder %s2568_s26, %s2564_s14  ;;  %p2572_p11 = scmp.lt.u32.totalorder %s2564_s14, %s3134_s8 }
 0x36f   : > { %p2566_p6 = pnand %p2565_p13, %p3197_p0 }
 0x370   : > { %p2571_p8 = por %p2570_p7, %p2569_p4 }
 0x371   : > { %p2567_p10 = pneg %p2566_p6 }
 0x372   : > { %p2573_p1 = por %p2572_p11, %p2571_p8 }
 0x374   : > { %p2574_p3 = pnand %p2573_p1, %p2567_p10 }
 0x376   : > { %2577 = shalt.err (!%p2574_p3)
}
 0x377   : > { %2346 = dma.vmem_to_hbm [thread:$0]  (%p3197_p0), %s3136_s7, 128, %s3134_s8, %s1761_s9  }
 0x378 PF: > { %s1786_s12 = sand.u32 1, %s2608_s18   ;;  %p3198_p5 = scmp.ne.s32.totalorder %s3188_s25, 0 }
 0x379   : > { %p3199_p9 = scmp.ge.s32.totalorder %s2620_s21, 2  ;;  %s1787_s13 = scalar_lea.sflag [#allocation4], %s1786_s12 }
 0x37b   : > { %p2360_p12 = pnand %p3199_p9, %p3198_p5 }
 0x37d   : > { %2603 = dma.done.wait (!%p2360_p12), %s1787_s13, 128  }
 0x37e   : > { %2605 = vsyncadd (!%p2360_p12), %s1787_s13, 4294967168  ;;  %p19_p2 = scmp.ge.s32.totalorder %s2780_s16, 4   ;;  %s3200_s18 = smov %s2612_s19 }
 0x37f   : > { %s3201_s19 = smov %s2616_s20  ;;  %s3202_s20 = smov %s2789_s27 }
 0x380   : > { %s3203_s21 = smov %s2780_s16  ;;  %21 = sbr.rel (!%p19_p2) target bundleno = 6 (0x6), region = 97 }
 0x387   :  { %1792 = vsyncpa [#allocation3], 1 }
 0x388   :  { %1794 = vsyncpa [#allocation3 + $0x1], 1 }
 0x389   :  { %1795 = vsyncpa [#allocation6], 1 }
 0x38a   :  { %1796 = vsyncpa [#allocation4], 1 }
 0x38b   :  { %1798 = vsyncpa [#allocation4 + $0x1], 1 }

</bundles_post_ra>
